<compile_context>
chip_gen: v5e
topology: v5e:2x2
jax: 0.10.0
libtpu: 0.0.40
codegen_flags: <defaults>
</compile_context>

<pallas_src>
import jax
import jax.numpy as jnp
from jax.experimental import pallas as pl
from jax.experimental.pallas import tpu as pltpu


def _round_up(x, m):
    return (x + m - 1) // m * m


def _linear_kernel(x_ref, w_ref, b_ref, o_ref):
    # x_ref: (TM, K) bf16, w_ref: (K, TN) bf16, b_ref: (1, TN) f32,
    # o_ref: (TM, TN) out_dtype.  Accumulate and add bias in f32.
    acc = jnp.dot(x_ref[...], w_ref[...], preferred_element_type=jnp.float32)
    o_ref[...] = (acc + b_ref[...]).astype(o_ref.dtype)


def pallas_linear(x2d, weight, bias, *, tm=512, out_dtype=jnp.float32,
                  compute_dtype=jnp.bfloat16,
                  vmem_budget_bytes=40 * 1024 * 1024):
    """y = x2d @ weight + bias.

    Rows (M) are tiled; the (K, E) weight and bias stay resident in VMEM
    (constant-index BlockSpecs -> fetched once) unless they exceed the VMEM
    budget, in which case E is tiled as a fallback.  Inputs are cast to
    `compute_dtype` (bf16 by default) for the MXU; accumulation is f32.
    """
    M, K = x2d.shape
    K2, E = weight.shape
    assert K == K2

    cbytes = jnp.dtype(compute_dtype).itemsize
    obytes = jnp.dtype(out_dtype).itemsize

    x_c = x2d.astype(compute_dtype)
    w_c = weight.astype(compute_dtype)
    b2d = bias.reshape(1, E).astype(jnp.float32)   # bias added in f32

    # ---- row tile --------------------------------------------------------
    # bf16 sublane packing wants row tiles that are multiples of 16.
    row_align = 16 if cbytes < 4 else 8
    tm = min(tm, _round_up(M, row_align))
    # v7x shards "parallel" grid axes across its 2 TensorCores: keep >= 2
    # grid steps whenever there is enough work, so neither core sits idle.
    if pl.cdiv(M, tm) < 2 and M > row_align:
        tm = max(row_align, _round_up(pl.cdiv(M, 2), row_align))

    # Only if M is smaller than the minimum row tile do we pad rows (tiny).
    if tm > M:
        x_c = jnp.pad(x_c, ((0, tm - M), (0, 0)))
        M_in = tm
    else:
        M_in = M

    def vmem_est(tm_, tn_):
        return (2 * tm_ * K * cbytes      # x tiles (double buffered)
                + 2 * K * tn_ * cbytes    # weight tile(s)
                + 2 * tn_ * 4             # bias tile
                + 2 * tm_ * tn_ * obytes) # output tiles

    # ---- column tile -----------------------------------------------------
    # Keep the whole weight resident (fetched once) whenever it fits; only
    # tile E (multiples of 128) when the weight itself is too large.
    if 2 * K * E * cbytes <= vmem_budget_bytes // 2:
        tn = E
    else:
        tn = E
        for cand in (1024, 512, 256, 128):
            if cand < E:
                tn = cand
                if 2 * K * cand * cbytes <= vmem_budget_bytes // 2:
                    break

    # Shrink the row tile if the total estimate still exceeds the budget
    # (matters for very large K on v7x's 64 MiB VMEM).
    while tm > row_align and vmem_est(tm, tn) > vmem_budget_bytes:
        tm = max(row_align, _round_up(tm // 2, row_align))

    grid_m = pl.cdiv(M_in, tm)

    if tn == E:
        grid = (grid_m,)
        in_specs = [
            pl.BlockSpec((tm, K), lambda i: (i, 0)),
            pl.BlockSpec((K, E), lambda i: (0, 0)),   # constant -> DMA'd once
            pl.BlockSpec((1, E), lambda i: (0, 0)),   # constant -> DMA'd once
        ]
        out_specs = pl.BlockSpec((tm, E), lambda i: (i, 0))
        dims = ("parallel",)
        weight_passes = 1
    else:
        grid = (grid_m, pl.cdiv(E, tn))
        in_specs = [
            pl.BlockSpec((tm, K), lambda i, j: (i, 0)),
            pl.BlockSpec((K, tn), lambda i, j: (0, j)),
            pl.BlockSpec((1, tn), lambda i, j: (0, j)),
        ]
        out_specs = pl.BlockSpec((tm, tn), lambda i, j: (i, j))
        dims = ("parallel", "parallel")
        weight_passes = grid_m   # weight re-streamed once per row tile

    cost = pl.CostEstimate(
        flops=2 * M * K * E,
        transcendentals=0,
        bytes_accessed=int(M_in * K * cbytes
                           + weight_passes * K * E * cbytes
                           + E * 4
                           + M_in * E * obytes),
    )

    vmem_limit = int(min(64 * 2 ** 20,
                         max(32 * 2 ** 20, int(1.5 * vmem_est(tm, tn)))))

    out = pl.pallas_call(
        _linear_kernel,
        out_shape=jax.ShapeDtypeStruct((M_in, E), out_dtype),
        grid_spec=pltpu.PrefetchScalarGridSpec(
            num_scalar_prefetch=0,
            grid=grid,
            in_specs=in_specs,
            out_specs=out_specs,
        ),
        compiler_params=pltpu.CompilerParams(
            dimension_semantics=dims,
            vmem_limit_bytes=vmem_limit,
        ),
        cost_estimate=cost,
    )(x_c, w_c, b2d)

    if M_in != M:
        out = out[:M]
    return out


def patch_embed_3d(x, weight, bias, patch_size, *, out_dtype=None,
                   compute_dtype=jnp.bfloat16):
    """Forward pass of PatchEmbed3D.

    x:      (B, C, X, Y, Z) with X = Y = Z = img_size
    weight: (patch_size**3 * C, embed_dim)  (transposed vs. torch Linear)
    bias:   (embed_dim,)
    returns (B, num_patches, embed_dim) in `out_dtype` (default: x.dtype).

    Note: the matmul operands are down-cast to `compute_dtype` (bf16 by
    default) for MXU throughput / DMA bandwidth; accumulation stays f32.
    """
    B, C, X, Y, Z = x.shape
    P = patch_size
    assert X % P == 0 and Y % P == 0 and Z % P == 0
    h, w, d = X // P, Y // P, Z // P
    K = P * P * P * C
    E = weight.shape[1]
    if out_dtype is None:
        out_dtype = x.dtype

    # einops: 'b c (h p1) (w p2) (d p3) -> b (h w d) (p1 p2 p3 c)'
    # Done as ONE fused XLA pass: cast to bf16 (half-width copy) + permute.
    # TODO(synk): move this gather into the kernel (see header comment) to
    # drop the extra HBM write+read of the activation.
    xr = x.astype(compute_dtype).reshape(B, C, h, P, w, P, d, P)
    xr = jnp.transpose(xr, (0, 2, 4, 6, 3, 5, 7, 1))  # (B, h, w, d, p1, p2, p3, C)
    xr = xr.reshape(B * h * w * d, K)

    y = pallas_linear(xr, weight, bias, out_dtype=out_dtype,
                      compute_dtype=compute_dtype)
    return y.reshape(B, h * w * d, E)


if __name__ == "__main__":
    # Small synthetic config consistent with the module.
    img_size = 16
    patch_size = 4
    in_chans = 2
    embed_dim = 128
    batch = 2

    num_patches = img_size ** 3 // patch_size ** 3   # 64
    K = patch_size ** 3 * in_chans                    # 128

    key = jax.random.PRNGKey(0)
    kx, kw, kb = jax.random.split(key, 3)
    x = jax.random.normal(
        kx, (batch, in_chans, img_size, img_size, img_size), dtype=jnp.float32)
    # torch Linear stores (out, in); we keep the (in, out) transpose.
    weight = jax.random.normal(kw, (K, embed_dim), dtype=jnp.float32) * 0.02
    bias = jax.random.normal(kb, (embed_dim,), dtype=jnp.float32) * 0.02

    out = patch_embed_3d(x, weight, bias, patch_size)
    out = jax.block_until_ready(out)
    assert out.shape == (batch, num_patches, embed_dim)

    # Reference: same math (bf16-rounded operands, f32 accumulation) in JAX.
    xr = x.reshape(batch, in_chans, img_size // patch_size, patch_size,
                   img_size // patch_size, patch_size,
                   img_size // patch_size, patch_size)
    xr = jnp.transpose(xr, (0, 2, 4, 6, 3, 5, 7, 1)).reshape(
        batch, num_patches, K)
    ref = jnp.einsum(
        "bnk,ke->bne",
        xr.astype(jnp.bfloat16).astype(jnp.float32),
        weight.astype(jnp.bfloat16).astype(jnp.float32),
    ) + bias
    assert jnp.allclose(out, ref, atol=2e-2, rtol=2e-2), \
        float(jnp.max(jnp.abs(out - ref)))

    print("KERNEL_OK")
</pallas_src>

<mosaic_0001>
module attributes {stable_mosaic.version = 11 : i64} {
  func.func @_linear_kernel(%arg0: i32, %arg1: memref<64x128xbf16, #tpu.memory_space<vmem>>, %arg2: memref<128x128xbf16, #tpu.memory_space<vmem>>, %arg3: memref<1x128xf32, #tpu.memory_space<vmem>>, %arg4: memref<64x128xf32, #tpu.memory_space<vmem>>) attributes {dimension_semantics = [#tpu.dimension_semantics<parallel>], iteration_bounds = array<i64: 2>, scalar_prefetch = 0 : i64, scratch_operands = 0 : i64, tpu.core_type = #tpu.core_type<tc>, window_params = [{transform_indices = @transform_0, window_bounds = array<i64: 64, 128>}, {pipeline_mode = #tpu.pipeline_mode<synchronous>, transform_indices = @transform_1, window_bounds = array<i64: 128, 128>}, {pipeline_mode = #tpu.pipeline_mode<synchronous>, transform_indices = @transform_2, window_bounds = array<i64: 1, 128>}, {transform_indices = @transform_3, window_bounds = array<i64: 64, 128>}]} {
    %c0 = arith.constant 0 : index
    %c0_0 = arith.constant 0 : index
    %0 = vector.load %arg1[%c0, %c0_0] : memref<64x128xbf16, #tpu.memory_space<vmem>>, vector<64x128xbf16>
    %c0_1 = arith.constant 0 : index
    %c0_2 = arith.constant 0 : index
    %1 = vector.load %arg2[%c0_1, %c0_2] : memref<128x128xbf16, #tpu.memory_space<vmem>>, vector<128x128xbf16>
    %cst = arith.constant dense<0.000000e+00> : vector<64x128xf32>
    %2 = tpu.matmul %0, %1, %cst {dimension_numbers = #tpu.dot_dimension_numbers<[1], [0], [0], [1], [0, 0, 1, 1], [], []>} : vector<64x128xbf16>, vector<128x128xbf16>, vector<64x128xf32> -> vector<64x128xf32>
    %c0_3 = arith.constant 0 : index
    %c0_4 = arith.constant 0 : index
    %3 = vector.load %arg3[%c0_3, %c0_4] : memref<1x128xf32, #tpu.memory_space<vmem>>, vector<1x128xf32>
    %4 = vector.broadcast %3 : vector<1x128xf32> to vector<64x128xf32>
    %5 = arith.addf %2, %4 : vector<64x128xf32>
    %c0_5 = arith.constant 0 : index
    %c0_6 = arith.constant 0 : index
    %6 = vector.load %arg4[%c0_5, %c0_6] : memref<64x128xf32, #tpu.memory_space<vmem>>, vector<64x128xf32>
    tpu.vector_store %arg4[%c0_5, %c0_6], %5 {strides = array<i32>} : memref<64x128xf32, #tpu.memory_space<vmem>>, vector<64x128xf32>,
    return
  }
  func.func @transform_0(%arg0: i32) -> (i32, i32) {
    %c0_i32 = arith.constant 0 : i32
    %c0_i32_0 = arith.constant 0 : i32
    return %arg0, %c0_i32 : i32, i32
  }
  func.func @transform_1(%arg0: i32) -> (i32, i32) {
    %c0_i32 = arith.constant 0 : i32
    %c0_i32_0 = arith.constant 0 : i32
    %c0_i32_1 = arith.constant 0 : i32
    return %c0_i32, %c0_i32_0 : i32, i32
  }
  func.func @transform_2(%arg0: i32) -> (i32, i32) {
    %c0_i32 = arith.constant 0 : i32
    %c0_i32_0 = arith.constant 0 : i32
    %c0_i32_1 = arith.constant 0 : i32
    return %c0_i32, %c0_i32_0 : i32, i32
  }
  func.func @transform_3(%arg0: i32) -> (i32, i32) {
    %c0_i32 = arith.constant 0 : i32
    %c0_i32_0 = arith.constant 0 : i32
    return %arg0, %c0_i32 : i32, i32
  }
}

</mosaic_0001>

<bundles_post_ra>
// kernel: tpu_custom_call.1
= control target key start
LH: loop header
LB: loop body
LE: loop exit
PB: predicated region body
PF: predicated region fallthrough
CT: control target
= control target key end

     0   :  { %8 = vsyncpa [#allocation3], 0  ;;  %s921_s0 = inlined_call_operand.hbm [shape: bf16[128,128], index: 0, kind: input, shape index: {}]   ;;  %s922_s1 = inlined_call_operand.hbm [shape: bf16[128,128], index: 1, kind: input, shape index: {}]   ;;  %s923_s2 = inlined_call_operand.vmem [shape: f32[1,128], index: 2, kind: input, shape index: {}]   ;;  %s924_s3 = inlined_call_operand.hbm [shape: f32[128,128], index: 3, kind: output, shape index: {}]  }
   0x1   :  { %10 = vsyncpa [#allocation3 + $0x1], 0 }
   0x2   :  { %11 = vsyncpa [#allocation6], 0 }
   0x3   :  { %12 = vsyncpa [#allocation4], 0 }
   0x4   :  { %14 = vsyncpa [#allocation4 + $0x1], 0  ;;  %s767_s12 = smov 0   ;;  %s769_s13 = smov 0  }
   0x5   :  { %s771_s14 = smov 0   ;;  %s773_s15 = smov 0  }
   0x6 LB: > { %s788_s16 = sadd.s32 4294967295, %s740_s15   ;;  %s446_s17 = sadd.s32 4294967294, %s740_s15   ;;  %s740_s15 = sphi %s773_s15, %s934_s15   ;;  %s736_s14 = sphi %s771_s14, %s933_s14   ;;  %s732_s13 = sphi %s769_s13, %s932_s13   ;;  %s728_s12 = sphi %s767_s12, %s931_s12  }
   0x7   : > { %p40_p0 = scmp.ne.s32.totalorder %s732_s13, %s728_s12  ;;  %p41_p1 = scmp.eq.s32.totalorder %s788_s16, 0 }
   0x8   : > { %p106_p2 = scmp.eq.s32.totalorder %s788_s16, 1  ;;  %p112_p3 = scmp.eq.s32.totalorder %s446_s17, 1 }
   0x9   : > { %p797_p4 = por %p41_p1, %p40_p0  ;;  %p447_p5 = scmp.ge.s32.totalorder %s740_s15, 1 }
   0xa   : > { %p802_p6 = por %p112_p3, %p40_p0  ;;  %p119_p7 = scmp.lt.s32.totalorder %s740_s15, 3 }
   0xb   : > { %s130_s22 = sshll.u32 %s922_s1, 4  ;;  %s742_s24 = smov [#allocation5]   ;;  %s131_s22 = int_to_ptr.hbm [resolvable:$true] %s130_s22 }
   0xc   : > { %p810_p8 = pnand %p447_p5, %p119_p7  ;;  %s132_s25 = sshll.u32 %s742_s24, 4  ;;  %s133_s25 = int_to_ptr.vmem [resolvable:$true] %s132_s25 }
   0xd   : > { %s820_s26 = sadd.s32 1, %s740_s15   ;;  %s743_s27 = smov 64  }
   0xe   : > { %p556_p9 = pneg %p810_p8  ;;  %s744_s28 = smov 4  }
   0xf   : > { %s24_s29 = ssub.s32 %s740_s15, %s820_s26  ;;  %s27_s30 = sadd.s32 1, %s736_s14 }
  0x10   : > { %p557_p10 = pnand %p556_p9, %p41_p1  ;;  %p25_p12 = scmp.eq.s32.totalorder %s24_s29, 0 }
  0x11   : > { %p34_p13 = scmp.ne.s32.totalorder %s736_s14, %s732_s13  ;;  %p35_p0 = scmp.eq.s32.totalorder %s740_s15, 0 }
  0x12   : > { %559 = dma.hbm_to_vmem [thread:$0]  (!%p557_p10), %s131_s22, 1024, %s133_s25, [#allocation6], %s743_s27, %s743_s27, %s744_s28  }
  0x13   : > { %s832_s4 = scalar_select %p25_p12, %s736_s14, %s27_s30  }
  0x14   : > { %p836_p3 = por %p106_p2, %p34_p13  ;;  %p569_p5 = scmp.lt.s32.totalorder %s740_s15, 2 }
  0x15   : > { %s149_s6 = sand.u32 1, %s736_s14   ;;  %s510_s7 = sshll.u32 %s740_s15, 5 }
  0x16   : > { %p36_p7 = por %p35_p0, %p34_p13  ;;  %s450_s8 = sshll.u32 %s149_s6, 5 }
  0x17   : > { %s158_s11 = scalar_lea.hbm %s921_s0, %s510_s7  ;;  %s153_s20 = scalar_lea.vmem [#allocation2], %s450_s8 }
  0x18   : > { %s159_s17 = sshll.u32 %s158_s11, 4  ;;  %s161_s21 = sshll.u32 %s153_s20, 4  ;;  %s160_s17 = int_to_ptr.hbm [resolvable:$true] %s159_s17  ;;  %s162_s21 = int_to_ptr.vmem [resolvable:$true] %s161_s21 }
  0x19   : > { %p846_p9 = pnand %p569_p5, %p36_p7  ;;  %s150_s24 = scalar_lea.sflag [#allocation3], %s149_s6 }
  0x1a   : > { %s640_s25 = sshra.s32 %s160_s17, 4  ;;  %s647_s8 = scalar_lea.hbm %s921_s0, 64  ;;  %s641_s25 = int_to_ptr.hbm [resolvable:$true] %s640_s25 }
  0x1b   : > { %s642_s29 = scalar_lea.hbm %s641_s25, 32  ;;  %p644_p10 = pneg %p846_p9 }
  0x1c   : > { %p643_p2 = scmp.ne.s32.totalorder %s641_s25, %s642_s29  ;;  %p648_p0 = scmp.lt.s32.totalorder %s641_s25, %s921_s0 }
  0x1d   : > { %p649_p5 = scmp.lt.s32.totalorder %s647_s8, %s642_s29 }
  0x1e   : > { %p645_p12 = pnand %p644_p10, %p643_p2 }
  0x1f   : > { %p650_p7 = por %p649_p5, %p648_p0 }
  0x20   : > { %p646_p13 = pneg %p645_p12 }
  0x22   : > { %p651_p11 = pnand %p650_p7, %p646_p13 }
  0x24   : > { %654 = shalt.err (!%p651_p11)
}
  0x25   : > { %563 = dma.hbm_to_vmem [thread:$0]  (!%p846_p9), %s160_s17, 512, %s162_s21, %s150_s24, %s743_s27, %s743_s27, %s744_s28  }
  0x26   : > { %173 = sbr.rel (%p810_p8) target bundleno = 226 (0xe2), region = 32  ;;  %s866_s6 = sand.u32 (!%p810_p8), 1, %s732_s13  }
  0x27   : > { %s454_s11 = sshll.u32 (!%p810_p8), %s866_s6, 5  ;;  %s176_s20 = scalar_lea.sflag (!%p810_p8), [#allocation3], %s866_s6 }
  0x28   : > { %s870_s25 = scalar_lea.vmem (!%p810_p8), [#allocation2], %s454_s11 }
  0x2b   : > { %715 = dma.done.wait (%p797_p4), %s176_s20, 512  }
  0x2c   : > { %717 = vsyncadd (%p797_p4), %s176_s20, 4294966784 }
  0x2d   : > { %719 = dma.done.wait (%p41_p1), [#allocation6], 1024  }
  0x2e   : > { %721 = vsyncadd (%p41_p1), [#allocation6], 4294966272  ;;  %v522_v0 = vld [vmem:[#allocation5 + $0x38] sm:$0xff]  ;;  %v521_v1 = vld [vmem:[#allocation5 + $0x30] sm:$0xff]  ;;  %s456_s18 = sshll.u32 %s866_s6, 6  ;;  %s523_s17 = sshll.u32 %s788_s16, 6 }
  0x2f   : > { %310 = vmatpush.bf16.msra.mxu0 %v522_v0  ;;  %524 = vmatpush.bf16.msra.mxu1 %v522_v0  ;;  %v520_v2 = vld [vmem:[#allocation5 + $0x28] sm:$0xff]  ;;  %v519_v3 = vld [vmem:[#allocation5 + $0x20] sm:$0xff]  ;;  %v518_v4 = vld [vmem:[#allocation5 + $0x18] sm:$0xff]  ;;  %s207_s28 = scalar_lea.vmem [#allocation7], %s456_s18  ;;  %s359_s24 = scalar_lea.hbm %s924_s3, %s523_s17 }
  0x30   : > { %525 = vmatpush.bf16.msra.mxu2 %v522_v0  ;;  %526 = vmatpush.bf16.msra.mxu3 %v522_v0  ;;  %v517_v5 = vld [vmem:[#allocation5 + $0x10] sm:$0xff]  ;;  %v516_v6 = vld [vmem:[#allocation5 + $0x8] sm:$0xff]  ;;  %v515_v7 = vld [vmem:[#allocation5] sm:$0xff]  ;;  %s360_s29 = sshll.u32 %s207_s28, 4  ;;  %s362_s30 = sshll.u32 %s359_s24, 4  ;;  %s361_s29 = int_to_ptr.vmem [resolvable:$true] %s360_s29  ;;  %s363_s30 = int_to_ptr.hbm [resolvable:$true] %s362_s30 }
  0x31   : > { %v511_v8 = vld [vmem:[%s870_s25] sm:$0xff]  ;;  %v512_v9 = vld [vmem:[%s870_s25 + $0x8] sm:$0xff]  ;;  %v513_v10 = vld [vmem:[%s870_s25 + $0x10] sm:$0xff]  ;;  %s348_s16 = scalar_lea.sflag [#allocation4], %s866_s6  ;;  %s684_s7 = sshra.s32 %s363_s30, 4  ;;  %s685_s7 = int_to_ptr.hbm [resolvable:$true] %s684_s7 }
  0x32   : > { %v514_v11 = vld [vmem:[%s870_s25 + $0x18] sm:$0xff]  ;;  %v609_v12 = vld [vmem:[%s923_s2] ss:$0 sm:$0xff]  ;;  %s686_s8 = scalar_lea.hbm %s685_s7, 64  ;;  %s690_s11 = scalar_lea.hbm %s924_s3, 128 }
  0x33   : > { %311 = vmatpush.bf16.msra.mxu0 %v521_v1  ;;  %527 = vmatpush.bf16.msra.mxu1 %v521_v1  ;;  %p687_p1 = scmp.ne.s32.totalorder %s685_s7, %s686_s8  ;;  %p691_p11 = scmp.lt.s32.totalorder %s685_s7, %s924_s3 }
  0x34   : > { %528 = vmatpush.bf16.msra.mxu2 %v521_v1  ;;  %529 = vmatpush.bf16.msra.mxu3 %v521_v1  ;;  %p692_p9 = scmp.lt.s32.totalorder %s690_s11, %s686_s8 }
  0x35   : > { %p688_p4 = pnand %p687_p1, %p836_p3 }
  0x36   : > { %p693_p2 = por %p692_p9, %p691_p11 }
  0x37   : > { %312 = vmatpush.bf16.msra.mxu0 %v520_v2  ;;  %530 = vmatpush.bf16.msra.mxu1 %v520_v2  ;;  %p689_p8 = pneg %p688_p4 }
  0x38   : > { %531 = vmatpush.bf16.msra.mxu2 %v520_v2  ;;  %532 = vmatpush.bf16.msra.mxu3 %v520_v2 }
  0x39   : > { %p694_p10 = pnand %p693_p2, %p689_p8 }
  0x3b   : > { %313 = vmatpush.bf16.msra.mxu0 %v519_v3  ;;  %533 = vmatpush.bf16.msra.mxu1 %v519_v3 }
  0x3c   : > { %534 = vmatpush.bf16.msra.mxu2 %v519_v3  ;;  %535 = vmatpush.bf16.msra.mxu3 %v519_v3 }
  0x3f   : > { %314 = vmatpush.bf16.msra.mxu0 %v518_v4  ;;  %536 = vmatpush.bf16.msra.mxu1 %v518_v4 }
  0x40   : > { %537 = vmatpush.bf16.msra.mxu2 %v518_v4  ;;  %538 = vmatpush.bf16.msra.mxu3 %v518_v4 }
  0x43   : > { %315 = vmatpush.bf16.msra.mxu0 %v517_v5  ;;  %539 = vmatpush.bf16.msra.mxu1 %v517_v5 }
  0x44   : > { %540 = vmatpush.bf16.msra.mxu2 %v517_v5  ;;  %541 = vmatpush.bf16.msra.mxu3 %v517_v5 }
  0x47   : > { %316 = vmatpush.bf16.msra.mxu0 %v516_v6  ;;  %542 = vmatpush.bf16.msra.mxu1 %v516_v6 }
  0x48   : > { %543 = vmatpush.bf16.msra.mxu2 %v516_v6  ;;  %544 = vmatpush.bf16.msra.mxu3 %v516_v6 }
  0x4b   : > { %317 = vmatpush.bf16.msra.mxu0 %v515_v7  ;;  %545 = vmatpush.bf16.msra.mxu1 %v515_v7 }
  0x4c   : > { %546 = vmatpush.bf16.msra.mxu2 %v515_v7  ;;  %547 = vmatpush.bf16.msra.mxu3 %v515_v7 }
  0x4e   : > { %318 = vmatmul.bf16.vlgmr.msra.gmra.mxu0 %v511_v8  ;;  %323 = vmatmul.bf16.vlgmr.msra.gmra.mxu1 %v512_v9 }
  0x4f   : > { %328 = vmatmul.bf16.vlgmr.msra.gmra.mxu2 %v513_v10  ;;  %333 = vmatmul.bf16.vlgmr.msra.gmra.mxu3 %v514_v11 }
  0xcb   : > { %v319_v13 = vpop.f32.mrf.mxu0  ;;  %v324_v14 = vpop.f32.mrf.mxu1 }
  0xcc   : > { %v320_v15 = vadd.f32 %v609_v12, %v319_v13  ;;  %v325_v16 = vadd.f32 %v609_v12, %v324_v14 }
  0xce   : > { %339 = vst [vmem:[%s207_s28] sm:$0xff] %v320_v15 }
  0xcf   : > { %341 = vst [vmem:[%s207_s28 + $0x10] sm:$0xff] %v325_v16 }
  0xd2   : > { %v329_v17 = vpop.f32.mrf.mxu2  ;;  %v334_v18 = vpop.f32.mrf.mxu3 }
  0xd3   : > { %v330_v19 = vadd.f32 %v609_v12, %v329_v17  ;;  %v335_v20 = vadd.f32 %v609_v12, %v334_v18  ;;  %v321_v21 = vpop.f32.mrf.mxu0  ;;  %v326_v22 = vpop.f32.mrf.mxu1 }
  0xd4   : > { %v322_v23 = vadd.f32 %v609_v12, %v321_v21  ;;  %v327_v24 = vadd.f32 %v609_v12, %v326_v22 }
  0xd5   : > { %343 = vst [vmem:[%s207_s28 + $0x20] sm:$0xff] %v330_v19 }
  0xd6   : > { %345 = vst [vmem:[%s207_s28 + $0x30] sm:$0xff] %v335_v20 }
  0xd7   : > { %340 = vst [vmem:[%s207_s28 + $0x8] sm:$0xff] %v322_v23 }
  0xd8   : > { %342 = vst [vmem:[%s207_s28 + $0x18] sm:$0xff] %v327_v24 }
  0xda   : > { %v331_v25 = vpop.f32.mrf.mxu2  ;;  %v336_v26 = vpop.f32.mrf.mxu3 }
  0xdb   : > { %v332_v27 = vadd.f32 %v609_v12, %v331_v25  ;;  %v337_v28 = vadd.f32 %v609_v12, %v336_v26 }
  0xdd   : > { %344 = vst [vmem:[%s207_s28 + $0x28] sm:$0xff] %v332_v27 }
  0xde   : > { %346 = vst [vmem:[%s207_s28 + $0x38] sm:$0xff] %v337_v28 }
  0xdf   : > { %697 = shalt.err (!%p694_p10)
}
  0xe0   : > { %s745_s6 = smov 128   ;;  %s746_s18 = smov 8  }
  0xe1   : > { %554 = dma.vmem_to_hbm [thread:$0]  (%p836_p3), %s361_s29, 1024, %s363_s30, %s348_s16, %s745_s6, %s745_s6, %s746_s18  }
  0xe2 PF: > { %s377_s23 = sand.u32 1, %s728_s12   ;;  %p930_p12 = scmp.ge.s32.totalorder %s740_s15, 2 }
  0xe3   : > { %s378_s27 = scalar_lea.sflag [#allocation4], %s377_s23 }
  0xe4   : > { %p565_p13 = pnand %p930_p12, %p802_p6 }
  0xe6   : > { %p566_p0 = pneg %p565_p13 }
  0xe8   : > { %723 = dma.done.wait (%p566_p0), %s378_s27, 1024  }
  0xe9   : > { %725 = vsyncadd (%p566_p0), %s378_s27, 4294966272  ;;  %p17_p5 = scmp.ge.s32.totalorder %s820_s26, 4   ;;  %s931_s12 = smov %s732_s13 }
  0xea   : > { %s932_s13 = smov %s736_s14  ;;  %s933_s14 = smov %s832_s4 }
  0xeb   : > { %s934_s15 = smov %s820_s26  ;;  %19 = sbr.rel (!%p17_p5) target bundleno = 6 (0x6), region = 81 }
  0xf0   :  { %384 = vsyncpa [#allocation3], 1 }
  0xf1   :  { %386 = vsyncpa [#allocation3 + $0x1], 1 }
  0xf2   :  { %387 = vsyncpa [#allocation6], 1 }
  0xf3   :  { %388 = vsyncpa [#allocation4], 1 }
  0xf4   :  { %390 = vsyncpa [#allocation4 + $0x1], 1 }

</bundles_post_ra>
